<compile_context>
chip_gen: v7x
topology: tpu7x:2x2x1
jax: 0.10.0
libtpu: 0.0.40
codegen_flags: <defaults>
</compile_context>

<pallas_src>
import functools

import jax
import jax.numpy as jnp
from jax.experimental import pallas as pl
from jax.experimental.pallas import tpu as pltpu

_LANE = 128     # lane width (last dim)
_SUBLANE = 8    # sublane width (second-to-last dim)


def _round_up(n, m):
    return ((n + m - 1) // m) * m


def _choose_tile(batch, block_b):
    """Batch tile: multiple of 8, <= block_b, and >= 2 grid steps when there is
    more than one sublane-tile of work (so megacore sharding engages on v7x)."""
    b8 = _round_up(batch, _SUBLANE)
    tb = min(block_b, b8)
    if _SUBLANE < b8 <= 2 * block_b:
        half = _round_up((b8 + 1) // 2, _SUBLANE)
        tb = min(tb, half)
    return tb


def qvalue_kernel(action_dim, x_ref, w1_ref, b1_ref, w2_ref, b2_ref, o_ref):
    # fc1 + ReLU, accumulated in f32 on the MXU.
    h = jnp.dot(x_ref[...], w1_ref[...], preferred_element_type=jnp.float32)
    h = jnp.maximum(h + b1_ref[...], 0.0)          # [tb, Hp] + [1, Hp]
    # NOTE: padded hidden lanes stay exactly 0 because the b1 pad is 0 and
    # relu(0) == 0; if the activation ever changes to f with f(0) != 0, the
    # padded lanes must be re-masked here.
    # fc2 on the Ap-padded weight (f32 accumulator fed straight in, no downcast).
    out = jnp.dot(h, w2_ref[...], preferred_element_type=jnp.float32)  # [tb, Ap]
    # Narrow, lane-masked store: only the real action_dim lanes hit HBM.
    o_ref[...] = (out[:, :action_dim] + b2_ref[...]).astype(o_ref.dtype)


@functools.partial(jax.jit, static_argnames=("action_dim", "block_b"))
def _qvalue_forward(x, w1p, b1p, w2p, b2, *, action_dim, block_b):
    B, state_dim = x.shape
    Hp = w1p.shape[1]
    Ap = w2p.shape[1]

    tb = _choose_tile(B, block_b)
    Bp = _round_up(B, tb)
    xp = x if Bp == B else jnp.zeros((Bp, state_dim), x.dtype).at[:B].set(x)

    out = pl.pallas_call(
        functools.partial(qvalue_kernel, action_dim),
        out_shape=jax.ShapeDtypeStruct((Bp, action_dim), x.dtype),
        grid=(Bp // tb,),
        in_specs=[
            # x streams per batch tile (double-buffered by default).
            pl.BlockSpec((tb, state_dim), lambda i: (i, 0)),
            # Weights/biases: constant index_map -> VMEM-resident, DMA'd once;
            # single-buffered since they are never revisited with a new index.
            pl.BlockSpec((state_dim, Hp), lambda i: (0, 0),
                         pipeline_mode=pl.Buffered(1)),
            pl.BlockSpec((1, Hp), lambda i: (0, 0),
                         pipeline_mode=pl.Buffered(1)),
            pl.BlockSpec((Hp, Ap), lambda i: (0, 0),
                         pipeline_mode=pl.Buffered(1)),
            pl.BlockSpec((1, action_dim), lambda i: (0, 0),
                         pipeline_mode=pl.Buffered(1)),
        ],
        # Narrow output: block last dim == full array last dim (legal), so the
        # HBM writeback is action_dim lanes, not a 128-padded slab.
        out_specs=pl.BlockSpec((tb, action_dim), lambda i: (i, 0)),
        compiler_params=pltpu.CompilerParams(
            dimension_semantics=("parallel",),   # megacore sharding on v7x
        ),
    )(xp, w1p, b1p, w2p, b2)

    return out[:B]


def make_qvalue_net(w1, b1, w2, b2, *, block_b=1024):
    """Pads the parameters ONCE (hoisted out of the per-call path) and returns
    a forward closure: x [B, state_dim] -> [B, action_dim]."""
    state_dim, hidden_dim = w1.shape
    action_dim = w2.shape[1]

    Hp = _round_up(hidden_dim, _LANE)
    Ap = _round_up(action_dim, _LANE)

    # Lane-dense zero padding of hidden / fc2-output dims for the in-VMEM
    # matmuls.  Padded hidden lanes are exactly 0 through bias + ReLU, so they
    # contribute nothing to fc2; the fc2 result is sliced to action_dim before
    # the HBM store, so the Ap padding never leaves VMEM.
    w1p = jnp.zeros((state_dim, Hp), w1.dtype).at[:, :hidden_dim].set(w1)
    b1p = jnp.zeros((1, Hp), b1.dtype).at[:, :hidden_dim].set(
        jnp.reshape(b1, (1, hidden_dim)))
    w2p = jnp.zeros((Hp, Ap), w2.dtype).at[:hidden_dim, :action_dim].set(w2)
    b2r = jnp.reshape(b2, (1, action_dim))

    def forward(x):
        return _qvalue_forward(x, w1p, b1p, w2p, b2r,
                               action_dim=action_dim, block_b=block_b)

    return forward


def init_linear_params(key, in_features, out_features, dtype=jnp.float32):
    """Deterministic init mimicking PyTorch nn.Linear default:
    U(-1/sqrt(fan_in), 1/sqrt(fan_in)) for both weight and bias."""
    kw, kb = jax.random.split(key)
    bound = 1.0 / jnp.sqrt(jnp.asarray(in_features, dtype))
    # stored as [in, out] (transpose of torch's [out, in]) for x @ W
    w = jax.random.uniform(kw, (in_features, out_features), dtype,
                           minval=-bound, maxval=bound)
    b = jax.random.uniform(kb, (1, out_features), dtype,
                           minval=-bound, maxval=bound)
    return w, b


if __name__ == "__main__":
    # Small shapes consistent with the module's forward.
    batch, state_dim, hidden_dim, action_dim = 8, 4, 32, 2

    key = jax.random.PRNGKey(0)
    k_x, k_fc1, k_fc2 = jax.random.split(key, 3)

    x = jax.random.normal(k_x, (batch, state_dim), jnp.float32)
    w1, b1 = init_linear_params(k_fc1, state_dim, hidden_dim)
    w2, b2 = init_linear_params(k_fc2, hidden_dim, action_dim)

    qvalue_net = make_qvalue_net(w1, b1, w2, b2)   # padding done once here

    out = jax.block_until_ready(qvalue_net(x))
    ref = jnp.maximum(x @ w1 + b1, 0.0) @ w2 + b2
    assert out.shape == (batch, action_dim)
    assert jnp.allclose(out, ref, atol=1e-5, rtol=1e-5)

    # Also exercise the multi-tile (grid >= 2, megacore-split) + batch-pad path.
    k_big = jax.random.fold_in(key, 7)
    x_big = jax.random.normal(k_big, (200, state_dim), jnp.float32)
    out_big = jax.block_until_ready(qvalue_net(x_big))
    ref_big = jnp.maximum(x_big @ w1 + b1, 0.0) @ w2 + b2
    assert out_big.shape == (200, action_dim)
    assert jnp.allclose(out_big, ref_big, atol=1e-5, rtol=1e-5)

    print("KERNEL_OK")
</pallas_src>

<mosaic_0001>
module attributes {stable_mosaic.version = 11 : i64} {
  func.func @qvalue_kernel(%arg0: i32, %arg1: memref<8x4xf32, #tpu.memory_space<vmem>>, %arg2: memref<4x128xf32, #tpu.memory_space<vmem>>, %arg3: memref<1x128xf32, #tpu.memory_space<vmem>>, %arg4: memref<128x128xf32, #tpu.memory_space<vmem>>, %arg5: memref<1x2xf32, #tpu.memory_space<vmem>>, %arg6: memref<8x2xf32, #tpu.memory_space<vmem>>) attributes {dimension_semantics = [#tpu.dimension_semantics<parallel>], iteration_bounds = array<i64: 1>, scalar_prefetch = 0 : i64, scratch_operands = 0 : i64, tpu.core_type = #tpu.core_type<tc>, window_params = [{transform_indices = @transform_0, window_bounds = array<i64: 8, 4>}, {pipeline_mode = #tpu.pipeline_mode<synchronous>, transform_indices = @transform_1, window_bounds = array<i64: 4, 128>}, {pipeline_mode = #tpu.pipeline_mode<synchronous>, transform_indices = @transform_2, window_bounds = array<i64: 1, 128>}, {pipeline_mode = #tpu.pipeline_mode<synchronous>, transform_indices = @transform_3, window_bounds = array<i64: 128, 128>}, {pipeline_mode = #tpu.pipeline_mode<synchronous>, transform_indices = @transform_4, window_bounds = array<i64: 1, 2>}, {transform_indices = @transform_5, window_bounds = array<i64: 8, 2>}]} {
    %c0 = arith.constant 0 : index
    %c0_0 = arith.constant 0 : index
    %0 = vector.load %arg1[%c0, %c0_0] : memref<8x4xf32, #tpu.memory_space<vmem>>, vector<8x4xf32>
    %c0_1 = arith.constant 0 : index
    %c0_2 = arith.constant 0 : index
    %1 = vector.load %arg2[%c0_1, %c0_2] : memref<4x128xf32, #tpu.memory_space<vmem>>, vector<4x128xf32>
    %cst = arith.constant dense<0.000000e+00> : vector<8x128xf32>
    %2 = tpu.matmul %0, %1, %cst {dimension_numbers = #tpu.dot_dimension_numbers<[1], [0], [0], [1], [0, 0, 1, 1], [], []>} : vector<8x4xf32>, vector<4x128xf32>, vector<8x128xf32> -> vector<8x128xf32>
    %c0_3 = arith.constant 0 : index
    %c0_4 = arith.constant 0 : index
    %3 = vector.load %arg3[%c0_3, %c0_4] : memref<1x128xf32, #tpu.memory_space<vmem>>, vector<1x128xf32>
    %4 = vector.broadcast %3 : vector<1x128xf32> to vector<8x128xf32>
    %5 = arith.addf %2, %4 : vector<8x128xf32>
    %cst_5 = arith.constant 0.000000e+00 : f32
    %6 = vector.broadcast %cst_5 : f32 to vector<8x128xf32>
    %7 = arith.maximumf %5, %6 : vector<8x128xf32>
    %c0_6 = arith.constant 0 : index
    %c0_7 = arith.constant 0 : index
    %8 = vector.load %arg4[%c0_6, %c0_7] : memref<128x128xf32, #tpu.memory_space<vmem>>, vector<128x128xf32>
    %cst_8 = arith.constant dense<0.000000e+00> : vector<8x128xf32>
    %9 = tpu.matmul %7, %8, %cst_8 {dimension_numbers = #tpu.dot_dimension_numbers<[1], [0], [0], [1], [0, 0, 1, 1], [], []>} : vector<8x128xf32>, vector<128x128xf32>, vector<8x128xf32> -> vector<8x128xf32>
    %10 = vector.extract_strided_slice %9 {offsets = [0, 0], sizes = [8, 2], strides = [1, 1]} : vector<8x128xf32> to vector<8x2xf32>
    %c0_9 = arith.constant 0 : index
    %c0_10 = arith.constant 0 : index
    %11 = vector.load %arg5[%c0_9, %c0_10] : memref<1x2xf32, #tpu.memory_space<vmem>>, vector<1x2xf32>
    %12 = vector.broadcast %11 : vector<1x2xf32> to vector<8x2xf32>
    %13 = arith.addf %10, %12 : vector<8x2xf32>
    %c0_11 = arith.constant 0 : index
    %c0_12 = arith.constant 0 : index
    %14 = vector.load %arg6[%c0_11, %c0_12] : memref<8x2xf32, #tpu.memory_space<vmem>>, vector<8x2xf32>
    tpu.vector_store %arg6[%c0_11, %c0_12], %13 {strides = array<i32>} : memref<8x2xf32, #tpu.memory_space<vmem>>, vector<8x2xf32>,
    return
  }
  func.func @transform_0(%arg0: i32) -> (i32, i32) {
    %c0_i32 = arith.constant 0 : i32
    %c0_i32_0 = arith.constant 0 : i32
    return %arg0, %c0_i32 : i32, i32
  }
  func.func @transform_1(%arg0: i32) -> (i32, i32) {
    %c0_i32 = arith.constant 0 : i32
    %c0_i32_0 = arith.constant 0 : i32
    %c0_i32_1 = arith.constant 0 : i32
    return %c0_i32, %c0_i32_0 : i32, i32
  }
  func.func @transform_2(%arg0: i32) -> (i32, i32) {
    %c0_i32 = arith.constant 0 : i32
    %c0_i32_0 = arith.constant 0 : i32
    %c0_i32_1 = arith.constant 0 : i32
    return %c0_i32, %c0_i32_0 : i32, i32
  }
  func.func @transform_3(%arg0: i32) -> (i32, i32) {
    %c0_i32 = arith.constant 0 : i32
    %c0_i32_0 = arith.constant 0 : i32
    %c0_i32_1 = arith.constant 0 : i32
    return %c0_i32, %c0_i32_0 : i32, i32
  }
  func.func @transform_4(%arg0: i32) -> (i32, i32) {
    %c0_i32 = arith.constant 0 : i32
    %c0_i32_0 = arith.constant 0 : i32
    %c0_i32_1 = arith.constant 0 : i32
    return %c0_i32, %c0_i32_0 : i32, i32
  }
  func.func @transform_5(%arg0: i32) -> (i32, i32) {
    %c0_i32 = arith.constant 0 : i32
    %c0_i32_0 = arith.constant 0 : i32
    return %arg0, %c0_i32 : i32, i32
  }
}

</mosaic_0001>

<bundles_post_ra>
// kernel: _qvalue_forward.1
= control target key start
LH: loop header
LB: loop body
LE: loop exit
PB: predicated region body
PF: predicated region fallthrough
CT: control target
= control target key end

     0   :  { %10 = vsyncpa [#allocation3], 0  ;;  %s340_s18 = smov [#allocation2]   ;;  %s403_s0 = inlined_call_operand.vmem [shape: f32[8,4], index: 0, kind: input, shape index: {}]   ;;  %s404_s1 = inlined_call_operand.vmem [shape: f32[4,128], index: 1, kind: input, shape index: {}]   ;;  %s405_s2 = inlined_call_operand.vmem [shape: f32[1,128], index: 2, kind: input, shape index: {}]   ;;  %s406_s3 = inlined_call_operand.hbm [shape: f32[128,128], index: 3, kind: input, shape index: {}]   ;;  %s407_s4 = inlined_call_operand.vmem [shape: f32[1,2], index: 4, kind: input, shape index: {}]   ;;  %s408_s5 = inlined_call_operand.vmem [shape: f32[8,2], index: 5, kind: output, shape index: {}]  }
   0x1   :  { %s22_s19 = sshll.u32 %s340_s18, 4  ;;  %s316_s22 = scalar_lea.hbm %s406_s3, 2048  ;;  %s23_s19 = int_to_ptr.vmem [resolvable:$true] %s22_s19 }
   0x2   :  { %p317_p0 = scmp.ne.s32.totalorder %s406_s3, %s316_s22  ;;  %p320_p1 = scmp.lt.u32.totalorder %s316_s22, %s406_s3 }
   0x4   :  { %p322_p2 = pnand %p320_p1, %p317_p0 }
   0x6   :  { %325 = shalt.err (!%p322_p2)
}
   0x7   :  { %s326_s27 = scalar_lea.vmem %s23_s19, 2048  ;;  %p331_p4 = scmp.lt.s32.totalorder %s23_s19, %s23_s19 }
   0x8   :  { %p327_p3 = scmp.ne.s32.totalorder %s23_s19, %s326_s27  ;;  %p332_p5 = scmp.lt.s32.totalorder %s326_s27, %s326_s27 }
   0xa   :  { %p333_p6 = por %p332_p5, %p331_p4 }
   0xc   :  { %p334_p7 = pnand %p333_p6, %p327_p3 }
   0xe   :  { %337 = shalt.err (!%p334_p7)
}
   0xf   :  { %s341_s28 = smov 128   ;;  %s342_s29 = smov 8  }
  0x10   :  { %28 = dma.hbm_to_vmem [thread:$0]  %s406_s3, 2048, %s23_s19, [#allocation3], %s341_s28, %s341_s28, %s342_s29  }
  0x11   :  { %338 = dma.done.wait [#allocation3], 2048  }
  0x12   :  { %339 = vsyncadd [#allocation3], 4294965248  ;;  %v343_v0 = vmov 0.0   ;;  %vm344_vm0 = vmmov 0   ;;  %v345_v1 = vmov 0.0|0.0   ;;  %vm47_vm1 = vcmask 1043456  }
  0x13   :  { %246 = vmatprep.subr.mxu0 %v343_v0  ;;  %248 = vmatprep.mubr.msk.f32.mxu0 %vm344_vm0, %v343_v0  ;;  %vm43_vm2 = vcmask 31744   ;;  %v35_v2 = vld [vmem:[%s404_s1] sm:$0xf]  ;;  %v123_v5 = vld [vmem:[#allocation2 + $0x8] sm:$0xff]  ;;  %v124_v6 = vld [vmem:[#allocation2 + $0x10] sm:$0xff]  ;;  %vm216_vm3 = vcmask 15360  }
  0x14   :  { %286 = vmatprep.subr.bf16.mxu1 %v345_v1  ;;  %283 = vmatprep.mubr.msk.f32.mxu1 %vm344_vm0, %v343_v0  ;;  %v34_v3 = vld [vmem:[%s403_s0] sm:$0xff]  ;;  %v125_v7 = vld [vmem:[#allocation2 + $0x18] sm:$0xff]  ;;  %v127_v11 = vld [vmem:[#allocation2 + $0x28] sm:$0xff] }
  0x15   :  { %v122_v4 = vld [vmem:[#allocation2] sm:$0xff]  ;;  %247 = vmatpush3.msk.msra.mxu0 %vm47_vm1, %v35_v2  ;;  %v290_v9 = vpack.c.bf16 %v125_v7, %v124_v6  ;;  %v128_v13 = vld [vmem:[#allocation2 + $0x30] sm:$0xff]  ;;  %v129_v14 = vld [vmem:[#allocation2 + $0x38] sm:$0xff] }
  0x16   :  { %249 = vmatmul.mubr.msk.f32.vlgmr.msra.gmra.mrb[0].mxu0 %vm43_vm2, %v34_v3  ;;  %v287_v8 = vpack.c.bf16 %v123_v5, %v122_v4  ;;  %v126_v10 = vld [vmem:[#allocation2 + $0x20] sm:$0xff]  ;;  %v296_v15 = vpack.c.bf16 %v129_v14, %v128_v13  ;;  %v131_v17 = vld [vmem:[#allocation2 + $0x48] sm:$0xff]  ;;  %v132_v19 = vld [vmem:[#allocation2 + $0x50] sm:$0xff] }
  0x17   :  { %v293_v12 = vpack.c.bf16 %v127_v11, %v126_v10  ;;  %v130_v16 = vld [vmem:[#allocation2 + $0x40] sm:$0xff]  ;;  %v133_v20 = vld [vmem:[#allocation2 + $0x58] sm:$0xff]  ;;  %v135_v23 = vld [vmem:[#allocation2 + $0x68] sm:$0xff] }
  0x18   :  { %288 = vmatpush3.bf16.msra.mxu1 %v287_v8  ;;  %v299_v18 = vpack.c.bf16 %v131_v17, %v130_v16  ;;  %v302_v21 = vpack.c.bf16 %v133_v20, %v132_v19  ;;  %v134_v22 = vld [vmem:[#allocation2 + $0x60] sm:$0xff]  ;;  %v136_v25 = vld [vmem:[#allocation2 + $0x70] sm:$0xff]  ;;  %v137_v26 = vld [vmem:[#allocation2 + $0x78] sm:$0xff] }
  0x19   :  { %289 = vmatprep.subr.bf16.mxu1 %v345_v1  ;;  %v305_v24 = vpack.c.bf16 %v135_v23, %v134_v22  ;;  %v308_v27 = vpack.c.bf16 %v137_v26, %v136_v25  ;;  %v223_v28 = vld [vmem:[%s405_s2] ss:$0 sm:$0xff] }
  0x1a   :  { %v226_v33 = vld [vmem:[%s407_s4] ss:$0 sm:$0xff] }
  0x1c   :  { %291 = vmatpush3.bf16.msra.mxu1 %v290_v9 }
  0x1d   :  { %292 = vmatprep.subr.bf16.mxu1 %v345_v1 }
  0x20   :  { %294 = vmatpush3.bf16.msra.mxu1 %v293_v12 }
  0x21   :  { %295 = vmatprep.subr.bf16.mxu1 %v345_v1 }
  0x24   :  { %297 = vmatpush3.bf16.msra.mxu1 %v296_v15 }
  0x25   :  { %298 = vmatprep.subr.bf16.mxu1 %v345_v1 }
  0x28   :  { %300 = vmatpush3.bf16.msra.mxu1 %v299_v18 }
  0x29   :  { %301 = vmatprep.subr.bf16.mxu1 %v345_v1 }
  0x2c   :  { %303 = vmatpush3.bf16.msra.mxu1 %v302_v21 }
  0x2d   :  { %304 = vmatprep.subr.bf16.mxu1 %v345_v1 }
  0x30   :  { %306 = vmatpush3.bf16.msra.mxu1 %v305_v24 }
  0x31   :  { %307 = vmatprep.subr.bf16.mxu1 %v345_v1 }
  0x34   :  { %309 = vmatpush3.bf16.msra.mxu1 %v308_v27 }
  0xe9   :  { %v117_v29 = vpop.f32.mrb[0].mxu0 }
  0xea   :  { %v118_v30 = vadd.f32 %v223_v28, %v117_v29  ;;  %v250_v31 = vpop.f32.mrb[1].mxu0 }
  0xec   :  { %v121_v32 = vmax.f32 %v118_v30, 0.0 }
  0xee   :  { %284 = vmatmul.mubr.f32.vlgmr.msra.gmra.mrb[0].mxu1 %v121_v32 }
 0x1c1   :  { %v204_v34 = vpop.f32.mrb[0].mxu1 }
 0x1c2   :  { %v215_v35 = vadd.f32 %v226_v33, %v204_v34  ;;  %v285_v36 = vpop.f32.mrb[1].mxu1 }
 0x1c4   :  { %217 = vst.msk [vmem:[%s408_s5] sm:$0xff] %vm216_vm3, %v215_v35 }
 0x1c5   :  { %222 = vsyncpa [#allocation3], 1 }

</bundles_post_ra>
